<compile_context>
chip_gen: v5e
topology: v5e:2x2
jax: 0.10.0
libtpu: 0.0.40
codegen_flags: <defaults>
</compile_context>

<pallas_src>
import jax
import jax.numpy as jnp
from jax.experimental import pallas as pl
from jax.experimental.pallas import tpu as pltpu

IN = 4
OUT = 4


def _mlp_pow_log_kernel(x_ref, w0_ref, b0_ref, w78_ref, b78_ref, o_ref):
    x = x_ref[...]                                  # (B, IN)  f32
    w0 = w0_ref[...]                                # (IN, OUT)
    w78 = w78_ref[...]                              # (IN, 2*OUT)  [fc_7 | fc_8]

    # ---- fc_0 + ReLU : VPU broadcast-MAC, K = IN unrolled (no MXU) ----
    acc0 = x[:, 0:1] * w0[0:1, :]
    for k in range(1, IN):
        acc0 = acc0 + x[:, k:k + 1] * w0[k:k + 1, :]
    v1 = jnp.maximum(acc0 + b0_ref[...], 0.0)       # (B, OUT)

    # ---- fused fc_7 | fc_8 : one (IN, 2*OUT) VPU broadcast-MAC ----
    acc = v1[:, 0:1] * w78[0:1, :]
    for k in range(1, OUT):
        acc = acc + v1[:, k:k + 1] * w78[k:k + 1, :]
    v48 = acc + b78_ref[...]                        # (B, 2*OUT)
    v4 = v48[:, :OUT]
    v8 = v48[:, OUT:]

    # ---- log(pow(v4, v8)) fused: single EUP log + VPU selects ----
    # Reproduces torch.pow -> log semantics exactly on the corner cases
    # (v4 < 0 with integer / non-integer exponent, v4 == 0) without calling
    # exp or a second log.
    abs_log = v8 * jnp.log(jnp.abs(v4))             # = log(|v4| ** v8)
    inf = jnp.float32(jnp.inf)
    nan = jnp.float32(jnp.nan)
    # v4 == 0 : pow -> {0, 1, +inf}  ->  log -> {-inf, 0, +inf}
    zero_case = jnp.where(v8 == 0.0, jnp.float32(0.0),
                          jnp.where(v8 > 0.0, -inf, inf))
    # v4 < 0 : pow is NaN unless v8 is an integer; positive only if even.
    is_int = v8 == jnp.floor(v8)
    is_even_int = is_int & (jnp.floor(v8 * 0.5) * 2.0 == v8)
    neg_case = jnp.where(is_even_int, abs_log, nan)
    # TODO(synk): torch.nn.functional.log does not exist in PyTorch; implemented
    #             as elementwise natural log (torch.log semantics), the evident intent.
    o_ref[...] = jnp.where(v4 > 0.0, abs_log,
                           jnp.where(v4 == 0.0, zero_case, neg_case))


def mlp_pow_log(x, w0, b0, w7, b7, w8, b8):
    B = x.shape[0]
    # Host-side fusion of the two second-layer linears into a single pass.
    w78 = jnp.concatenate([w7, w8], axis=1)         # (IN, 2*OUT)
    b78 = jnp.concatenate([b7, b8], axis=1)         # (1, 2*OUT)

    vmem = pl.BlockSpec(memory_space=pltpu.MemorySpace.VMEM)
    n_out = B * OUT
    bytes_accessed = 4 * (x.size + w0.size + b0.size + w78.size + b78.size + n_out)
    cost = pl.CostEstimate(
        flops=2 * B * IN * OUT * 3,                 # three (IN x OUT) linears
        transcendentals=n_out,                      # one log per output element
        bytes_accessed=bytes_accessed,
    )
    return pl.pallas_call(
        _mlp_pow_log_kernel,
        out_shape=jax.ShapeDtypeStruct((B, OUT), jnp.float32),
        in_specs=[vmem] * 5,
        out_specs=vmem,
        cost_estimate=cost,
    )(x, w0, b0, w78, b78)


def init_linear_params(key, fan_in, fan_out):
    # Matches torch.nn.Linear default init: U(-1/sqrt(fan_in), 1/sqrt(fan_in)).
    kw, kb = jax.random.split(key)
    bound = 1.0 / jnp.sqrt(float(fan_in))
    # Stored already transposed: (fan_in, fan_out).
    w = jax.random.uniform(kw, (fan_in, fan_out), jnp.float32, -bound, bound)
    b = jax.random.uniform(kb, (1, fan_out), jnp.float32, -bound, bound)
    return w, b


if __name__ == "__main__":
    key = jax.random.PRNGKey(0)
    kx, k0, k7, k8 = jax.random.split(key, 4)

    # Input consistent with the module: x = torch.randn(1, 4)
    x = jax.random.normal(kx, (1, IN), jnp.float32)

    w0, b0 = init_linear_params(k0, IN, OUT)
    w7, b7 = init_linear_params(k7, IN, OUT)
    w8, b8 = init_linear_params(k8, IN, OUT)

    out = mlp_pow_log(x, w0, b0, w7, b7, w8, b8)
    jax.block_until_ready(out)
    print("KERNEL_OK")
</pallas_src>

<mosaic_0001>
module attributes {stable_mosaic.version = 11 : i64} {
  func.func @_mlp_pow_log_kernel(%arg0: memref<1x4xf32, #tpu.memory_space<vmem>>, %arg1: memref<4x4xf32, #tpu.memory_space<vmem>>, %arg2: memref<1x4xf32, #tpu.memory_space<vmem>>, %arg3: memref<4x8xf32, #tpu.memory_space<vmem>>, %arg4: memref<1x8xf32, #tpu.memory_space<vmem>>, %arg5: memref<1x4xf32, #tpu.memory_space<vmem>>) attributes {dimension_semantics = [], scalar_prefetch = 0 : i64, scratch_operands = 0 : i64, tpu.core_type = #tpu.core_type<tc>} {
    %c0 = arith.constant 0 : index
    %c0_0 = arith.constant 0 : index
    %0 = vector.load %arg0[%c0, %c0_0] : memref<1x4xf32, #tpu.memory_space<vmem>>, vector<1x4xf32>
    %c0_1 = arith.constant 0 : index
    %c0_2 = arith.constant 0 : index
    %1 = vector.load %arg1[%c0_1, %c0_2] : memref<4x4xf32, #tpu.memory_space<vmem>>, vector<4x4xf32>
    %c0_3 = arith.constant 0 : index
    %c0_4 = arith.constant 0 : index
    %2 = vector.load %arg3[%c0_3, %c0_4] : memref<4x8xf32, #tpu.memory_space<vmem>>, vector<4x8xf32>
    %3 = vector.extract_strided_slice %0 {offsets = [0, 0], sizes = [1, 1], strides = [1, 1]} : vector<1x4xf32> to vector<1x1xf32>
    %4 = vector.extract_strided_slice %1 {offsets = [0, 0], sizes = [1, 4], strides = [1, 1]} : vector<4x4xf32> to vector<1x4xf32>
    %5 = vector.broadcast %3 : vector<1x1xf32> to vector<1x4xf32>
    %6 = arith.mulf %5, %4 : vector<1x4xf32>
    %7 = vector.extract_strided_slice %0 {offsets = [0, 1], sizes = [1, 1], strides = [1, 1]} : vector<1x4xf32> to vector<1x1xf32>
    %8 = vector.extract_strided_slice %1 {offsets = [1, 0], sizes = [1, 4], strides = [1, 1]} : vector<4x4xf32> to vector<1x4xf32>
    %9 = vector.broadcast %7 : vector<1x1xf32> to vector<1x4xf32>
    %10 = arith.mulf %9, %8 : vector<1x4xf32>
    %11 = arith.addf %6, %10 : vector<1x4xf32>
    %12 = vector.extract_strided_slice %0 {offsets = [0, 2], sizes = [1, 1], strides = [1, 1]} : vector<1x4xf32> to vector<1x1xf32>
    %13 = vector.extract_strided_slice %1 {offsets = [2, 0], sizes = [1, 4], strides = [1, 1]} : vector<4x4xf32> to vector<1x4xf32>
    %14 = vector.broadcast %12 : vector<1x1xf32> to vector<1x4xf32>
    %15 = arith.mulf %14, %13 : vector<1x4xf32>
    %16 = arith.addf %11, %15 : vector<1x4xf32>
    %17 = vector.extract_strided_slice %0 {offsets = [0, 3], sizes = [1, 1], strides = [1, 1]} : vector<1x4xf32> to vector<1x1xf32>
    %18 = vector.extract_strided_slice %1 {offsets = [3, 0], sizes = [1, 4], strides = [1, 1]} : vector<4x4xf32> to vector<1x4xf32>
    %19 = vector.broadcast %17 : vector<1x1xf32> to vector<1x4xf32>
    %20 = arith.mulf %19, %18 : vector<1x4xf32>
    %21 = arith.addf %16, %20 : vector<1x4xf32>
    %c0_5 = arith.constant 0 : index
    %c0_6 = arith.constant 0 : index
    %22 = vector.load %arg2[%c0_5, %c0_6] : memref<1x4xf32, #tpu.memory_space<vmem>>, vector<1x4xf32>
    %23 = arith.addf %21, %22 : vector<1x4xf32>
    %cst = arith.constant 0.000000e+00 : f32
    %24 = vector.broadcast %cst : f32 to vector<1x4xf32>
    %25 = arith.maximumf %23, %24 : vector<1x4xf32>
    %26 = vector.extract_strided_slice %25 {offsets = [0, 0], sizes = [1, 1], strides = [1, 1]} : vector<1x4xf32> to vector<1x1xf32>
    %27 = vector.extract_strided_slice %2 {offsets = [0, 0], sizes = [1, 8], strides = [1, 1]} : vector<4x8xf32> to vector<1x8xf32>
    %28 = vector.broadcast %26 : vector<1x1xf32> to vector<1x8xf32>
    %29 = arith.mulf %28, %27 : vector<1x8xf32>
    %30 = vector.extract_strided_slice %25 {offsets = [0, 1], sizes = [1, 1], strides = [1, 1]} : vector<1x4xf32> to vector<1x1xf32>
    %31 = vector.extract_strided_slice %2 {offsets = [1, 0], sizes = [1, 8], strides = [1, 1]} : vector<4x8xf32> to vector<1x8xf32>
    %32 = vector.broadcast %30 : vector<1x1xf32> to vector<1x8xf32>
    %33 = arith.mulf %32, %31 : vector<1x8xf32>
    %34 = arith.addf %29, %33 : vector<1x8xf32>
    %35 = vector.extract_strided_slice %25 {offsets = [0, 2], sizes = [1, 1], strides = [1, 1]} : vector<1x4xf32> to vector<1x1xf32>
    %36 = vector.extract_strided_slice %2 {offsets = [2, 0], sizes = [1, 8], strides = [1, 1]} : vector<4x8xf32> to vector<1x8xf32>
    %37 = vector.broadcast %35 : vector<1x1xf32> to vector<1x8xf32>
    %38 = arith.mulf %37, %36 : vector<1x8xf32>
    %39 = arith.addf %34, %38 : vector<1x8xf32>
    %40 = vector.extract_strided_slice %25 {offsets = [0, 3], sizes = [1, 1], strides = [1, 1]} : vector<1x4xf32> to vector<1x1xf32>
    %41 = vector.extract_strided_slice %2 {offsets = [3, 0], sizes = [1, 8], strides = [1, 1]} : vector<4x8xf32> to vector<1x8xf32>
    %42 = vector.broadcast %40 : vector<1x1xf32> to vector<1x8xf32>
    %43 = arith.mulf %42, %41 : vector<1x8xf32>
    %44 = arith.addf %39, %43 : vector<1x8xf32>
    %c0_7 = arith.constant 0 : index
    %c0_8 = arith.constant 0 : index
    %45 = vector.load %arg4[%c0_7, %c0_8] : memref<1x8xf32, #tpu.memory_space<vmem>>, vector<1x8xf32>
    %46 = arith.addf %44, %45 : vector<1x8xf32>
    %47 = vector.extract_strided_slice %46 {offsets = [0, 0], sizes = [1, 4], strides = [1, 1]} : vector<1x8xf32> to vector<1x4xf32>
    %48 = vector.extract_strided_slice %46 {offsets = [0, 4], sizes = [1, 4], strides = [1, 1]} : vector<1x8xf32> to vector<1x4xf32>
    %49 = math.absf %47 : vector<1x4xf32>
    %50 = math.log %49 : vector<1x4xf32>
    %51 = arith.mulf %48, %50 : vector<1x4xf32>
    %cst_9 = arith.constant 0.000000e+00 : f32
    %52 = vector.broadcast %cst_9 : f32 to vector<1x4xf32>
    %53 = arith.cmpf oeq, %48, %52 : vector<1x4xf32>
    %cst_10 = arith.constant 0.000000e+00 : f32
    %54 = vector.broadcast %cst_10 : f32 to vector<1x4xf32>
    %55 = arith.cmpf ogt, %48, %54 : vector<1x4xf32>
    %cst_11 = arith.constant 0.000000e+00 : f32
    %cst_12 = arith.constant 0x7F800000 : f32
    %56 = arith.subf %cst_11, %cst_12 : f32
    %cst_13 = arith.constant 0x7F800000 : f32
    %57 = vector.broadcast %56 : f32 to vector<1x4xf32>
    %58 = vector.broadcast %cst_13 : f32 to vector<1x4xf32>
    %59 = arith.select %55, %57, %58 : vector<1x4xi1>, vector<1x4xf32>
    %cst_14 = arith.constant 0.000000e+00 : f32
    %60 = vector.broadcast %cst_14 : f32 to vector<1x4xf32>
    %61 = arith.select %53, %60, %59 : vector<1x4xi1>, vector<1x4xf32>
    %62 = math.floor %48 : vector<1x4xf32>
    %63 = arith.cmpf oeq, %48, %62 : vector<1x4xf32>
    %cst_15 = arith.constant 5.000000e-01 : f32
    %64 = vector.broadcast %cst_15 : f32 to vector<1x4xf32>
    %65 = arith.mulf %48, %64 : vector<1x4xf32>
    %66 = math.floor %65 : vector<1x4xf32>
    %cst_16 = arith.constant 2.000000e+00 : f32
    %67 = vector.broadcast %cst_16 : f32 to vector<1x4xf32>
    %68 = arith.mulf %66, %67 : vector<1x4xf32>
    %69 = arith.cmpf oeq, %68, %48 : vector<1x4xf32>
    %70 = arith.andi %63, %69 : vector<1x4xi1>
    %cst_17 = arith.constant 0x7FC00000 : f32
    %71 = vector.broadcast %cst_17 : f32 to vector<1x4xf32>
    %72 = arith.select %70, %51, %71 : vector<1x4xi1>, vector<1x4xf32>
    %cst_18 = arith.constant 0.000000e+00 : f32
    %73 = vector.broadcast %cst_18 : f32 to vector<1x4xf32>
    %74 = arith.cmpf ogt, %47, %73 : vector<1x4xf32>
    %cst_19 = arith.constant 0.000000e+00 : f32
    %75 = vector.broadcast %cst_19 : f32 to vector<1x4xf32>
    %76 = arith.cmpf oeq, %47, %75 : vector<1x4xf32>
    %77 = arith.select %76, %61, %72 : vector<1x4xi1>, vector<1x4xf32>
    %78 = arith.select %74, %51, %77 : vector<1x4xi1>, vector<1x4xf32>
    %c0_20 = arith.constant 0 : index
    %c0_21 = arith.constant 0 : index
    %79 = vector.load %arg5[%c0_20, %c0_21] : memref<1x4xf32, #tpu.memory_space<vmem>>, vector<1x4xf32>
    tpu.vector_store %arg5[%c0_20, %c0_21], %78 {strides = array<i32>} : memref<1x4xf32, #tpu.memory_space<vmem>>, vector<1x4xf32>,
    return
  }
}

</mosaic_0001>

<bundles_post_ra>
// kernel: tpu_custom_call.1
= control target key start
LH: loop header
LB: loop body
LE: loop exit
PB: predicated region body
PF: predicated region fallthrough
CT: control target
= control target key end

     0   :  { %10 = vsyncpa [#allocation3], 0  ;;  %s379_s0 = inlined_call_operand.hbm [shape: f32[1,4], index: 0, kind: input, shape index: {}]   ;;  %s380_s1 = inlined_call_operand.hbm [shape: f32[4,4], index: 1, kind: input, shape index: {}]   ;;  %s381_s2 = inlined_call_operand.vmem [shape: f32[1,4], index: 2, kind: input, shape index: {}]   ;;  %s382_s3 = inlined_call_operand.hbm [shape: f32[4,8], index: 3, kind: input, shape index: {}]   ;;  %s383_s4 = inlined_call_operand.vmem [shape: f32[1,8], index: 4, kind: input, shape index: {}]   ;;  %s384_s5 = inlined_call_operand.hbm [shape: f32[1,4], index: 5, kind: output, shape index: {}]  }
   0x1   :  { %11 = vsyncpa [#allocation6], 0  ;;  %s29_s20 = sshll.u32 %s380_s1, 4  ;;  %s30_s20 = int_to_ptr.hbm [resolvable:$true] %s29_s20 }
   0x2   :  { %12 = vsyncpa [#allocation4], 0  ;;  %s316_s21 = smov [#allocation5]   ;;  %s18_s25 = sshll.u32 %s379_s0, 4  ;;  %s19_s25 = int_to_ptr.hbm [resolvable:$true] %s18_s25 }
   0x3   :  { %s31_s22 = sshll.u32 %s316_s21, 4  ;;  %s317_s26 = smov [#allocation2]   ;;  %s32_s22 = int_to_ptr.vmem [resolvable:$true] %s31_s22 }
   0x4   :  { %34 = dma.hbm_to_vmem [thread:$0]  %s30_s20, 64, %s32_s22, [#allocation6]  }
   0x5   :  { %s20_s27 = sshll.u32 %s317_s26, 4  ;;  %s42_s30 = sshll.u32 %s382_s3, 4  ;;  %s21_s27 = int_to_ptr.vmem [resolvable:$true] %s20_s27  ;;  %s43_s30 = int_to_ptr.hbm [resolvable:$true] %s42_s30 }
   0x6   :  { %23 = dma.hbm_to_vmem [thread:$0]  %s19_s25, 16, %s21_s27, [#allocation3]  }
   0x7   :  { %s318_s1 = smov [#allocation7]  }
   0x8   :  { %s44_s6 = sshll.u32 %s318_s1, 4  ;;  %s45_s6 = int_to_ptr.vmem [resolvable:$true] %s44_s6 }
   0x9   :  { %47 = dma.hbm_to_vmem [thread:$0]  %s43_s30, 64, %s45_s6, [#allocation6]  }
   0xa   :  { %310 = dma.done.wait [#allocation3], 16  }
   0xb   :  { %311 = vsyncadd [#allocation3], 4294967280 }
   0xc   :  { %312 = dma.done.wait [#allocation6], 128  }
   0xd   :  { %313 = vsyncadd [#allocation6], 4294967168  ;;  %v319_v0 = vmov 1   ;;  %v320_v1 = vmov 2   ;;  %v321_v2 = vmov 0   ;;  %v322_v4 = vmov 3  }
   0xe   :  { %203 = vset.pattern.permute.xlu0 %v319_v0  ;;  %205 = vset.pattern.permute.xlu1 %v320_v1  ;;  %v62_v3 = vld [vmem:[#allocation2] sm:$0x1]  ;;  %v63_v8 = vld [vmem:[#allocation5] sm:$0xf]  ;;  %v64_v29 = vld [vmem:[#allocation7] sm:$0xf] }
   0xf   :  { %207 = vset.pattern.permute.xlu2 %v321_v2  ;;  %73 = vperm.xlu0 %203, %v62_v3   ;;  %v102_v23 = vld [vmem:[%s381_s2] sm:$0x1]  ;;  %v116_v30 = vrot.slane %v64_v29, 1  ;;  %v124_v32 = vrot.slane %v64_v29, 2  ;;  %v132_v34 = vrot.slane %v64_v29, 3  ;;  %v323_v45 = vmov inf  }
  0x10   :  { %83 = vperm.xlu1 %205, %v62_v3   ;;  %v136_v41 = vld [vmem:[%s383_s4] sm:$0x1]  ;;  %s324_s8 = smov 124   ;;  %s325_s9 = smov 4   ;;  %vm172_vm5 = vcmask 24576  }
  0x11   :  { %s326_s4 = smov [#allocation8]   ;;  %s181_s13 = sshll.u32 %s384_s5, 4  ;;  %s182_s13 = int_to_ptr.hbm [resolvable:$true] %s181_s13 }
  0x12   :  { %s179_s10 = sshll.u32 %s326_s4, 4  ;;  %s180_s10 = int_to_ptr.vmem [resolvable:$true] %s179_s10 }
  0x17   :  { %204 = vset.pattern.permute.xlu0 %v321_v2 }
  0x18   :  { %206 = vset.pattern.permute.xlu1 %v322_v4  ;;  %67 = vperm.xlu0 %204, %v62_v3  }
  0x19   :  { %93 = vperm.xlu1 %206, %v62_v3  }
  0x20   :  { %211 = vset.pattern.permute.xlu0 %v322_v4 }
  0x21   :  { %209 = vset.pattern.permute.xlu1 %v320_v1 }
  0x81   :  { %v74_v5 = vpop.permute.xlu0 %73 }
  0x82   :  { %v84_v6 = vpop.permute.xlu1 %83  ;;  %v76_v7 = vperm.slane %v74_v5, 0 }
  0x83   :  { %v86_v9 = vperm.slane %v84_v6, 0 }
  0x84   :  { %v77_v10 = vmul.f32 %v76_v7, %v63_v8 }
  0x85   :  { %v87_v13 = vmul.f32 %v86_v9, %v63_v8 }
  0x86   :  { %v79_v16 = vrot.slane %v77_v10, 1 }
  0x87   :  { %v89_v19 = vrot.slane %v87_v13, 2 }
  0x8a   :  { %v68_v11 = vpop.permute.xlu0 %67 }
  0x8b   :  { %v94_v12 = vpop.permute.xlu1 %93  ;;  %v70_v14 = vperm.slane %v68_v11, 0 }
  0x8c   :  { %v96_v15 = vperm.slane %v94_v12, 0 }
  0x8d   :  { %v71_v17 = vmul.f32 %v70_v14, %v63_v8 }
  0x8e   :  { %v97_v18 = vmul.f32 %v96_v15, %v63_v8 }
  0x8f   :  { %v81_v20 = vadd.f32 %v79_v16, %v71_v17 }
  0x90   :  { %v99_v21 = vrot.slane %v97_v18, 3 }
  0x91   :  { %v91_v22 = vadd.f32 %v89_v19, %v81_v20 }
  0x93   :  { %v101_v24 = vadd.f32 %v99_v21, %v91_v22 }
  0x95   :  { %v103_v25 = vadd.f32 %v102_v23, %v101_v24 }
  0x97   :  { %v104_v26 = vmax.f32 %v103_v25, 0.0 }
  0x99   :  { %121 = vperm.xlu1 %209, %v104_v26   ;;  %107 = vperm.xlu2 %207, %v104_v26  }
  0xa1   :  { %208 = vset.pattern.permute.xlu2 %v319_v0 }
  0xa2   :  { %112 = vperm.xlu2 %208, %v104_v26  }
  0xaa   :  { %210 = vset.pattern.permute.xlu2 %v322_v4 }
  0xab   :  { %129 = vperm.xlu2 %210, %v104_v26  }
  0xf3   :  { %v108_v27 = vpop.permute.xlu2 %107 }
  0xf4   :  { %v110_v33 = vmul.f32 %v108_v27, %v64_v29 }
  0xfc   :  { %v113_v28 = vpop.permute.xlu2 %112 }
  0xfd   :  { %v118_v31 = vmul.f32 %v116_v30, %v113_v28 }
  0xff   :  { %v119_v37 = vadd.f32 %v118_v31, %v110_v33 }
 0x105   :  { %v130_v35 = vpop.permute.xlu2 %129 }
 0x106   :  { %v134_v39 = vmul.f32 %v132_v34, %v130_v35 }
 0x10b   :  { %v122_v36 = vpop.permute.xlu1 %121 }
 0x10c   :  { %v126_v38 = vmul.f32 %v124_v32, %v122_v36 }
 0x10e   :  { %v127_v40 = vadd.f32 %v126_v38, %v119_v37 }
 0x110   :  { %v135_v42 = vadd.f32 %v134_v39, %v127_v40 }
 0x112   :  { %v137_v43 = vadd.f32 %v136_v41, %v135_v42 }
 0x114   :  { %vm146_vm0 = vcmp.eq.f32.partialorder %v137_v43, 0.0  ;;  %vm147_vm1 = vcmp.gt.f32.partialorder %v137_v43, 0.0  ;;  %v138_v44 = vand.u32 2147483647, %v137_v43  ;;  %v152_v50 = vmul.f32 0.5, %v137_v43 }
 0x115   :  { %v148_v46 = vsel %vm147_vm1, -inf, %v323_v45  ;;  %v150_v53 = vfloor.f32 %v137_v43 }
 0x116   :  { %v149_v47 = vsel %vm146_vm0, 0.0, %v148_v46  ;;  %212 = vlog2.f32 %v138_v44  ;;  %v153_v51 = vfloor.f32 %v152_v50 }
 0x117   :  { %159 = vrot.lane.b32.xlu1 %v149_v47, %s324_s8  ;;  %vm151_vm3 = vcmp.eq.f32.partialorder %v137_v43, %v150_v53 }
 0x118   :  { %v154_v52 = vmul.f32 2.0, %v153_v51 }
 0x11a   :  { %vm155_vm2 = vcmp.eq.f32.partialorder %v154_v52, %v137_v43 }
 0x11b   :  { %vm156_vm4 = vmand %vm151_vm3, %vm155_vm2 }
 0x11c   :  { %v213_v48 = vpop.eup %212 }
 0x11d   :  { %v140_v49 = vmul.f32 0.6931472, %v213_v48 }
 0x11f   :  { %142 = vrot.lane.b32.xlu0 %v140_v49, %s325_s9 }
 0x189   :  { %v160_v58 = vpop.permute.xlu1 %159 }
 0x191   :  { %v143_v54 = vpop.permute.xlu0 %142 }
 0x192   :  { %v145_v55 = vmul.f32 %v143_v54, %v137_v43 }
 0x194   :  { %168 = vrot.lane.b32.xlu0 %v145_v55, %s324_s8  ;;  %v157_v56 = vsel %vm156_vm4, %v145_v55, nan }
 0x195   :  { %163 = vrot.lane.b32.xlu2 %v157_v56, %s324_s8 }
 0x1ef   :  { %v164_v57 = vpop.permute.xlu2 %163 }
 0x1f0   :  { %v166_v59 = vsel %vm146_vm0, %v160_v58, %v164_v57 }
 0x206   :  { %v169_v60 = vpop.permute.xlu0 %168 }
 0x207   :  { %v171_v61 = vsel %vm147_vm1, %v169_v60, %v166_v59 }
 0x208   :  { %173 = vst.msk [vmem:[#allocation8] sm:$0x1] %vm172_vm5, %v171_v61 }
 0x209   :  { %184 = dma.vmem_to_hbm [thread:$0]  %s180_s10, 16, %s182_s13, [#allocation4]  }
 0x20a   :  { %314 = dma.done.wait [#allocation4], 16  }
 0x20b   :  { %315 = vsyncadd [#allocation4], 4294967280 }
 0x20c   :  { %189 = vsyncpa [#allocation3], 1 }
 0x20d   :  { %190 = vsyncpa [#allocation6], 1 }
 0x20e   :  { %191 = vsyncpa [#allocation4], 1 }

</bundles_post_ra>
